<compile_context>
chip_gen: v7x
topology: tpu7x:2x2x1
jax: 0.10.0
libtpu: 0.0.40
codegen_flags: <defaults>
</compile_context>

<pallas_src>
import functools

import jax
import jax.numpy as jnp
from jax.experimental import pallas as pl
from jax.experimental.pallas import tpu as pltpu

LN_EPS = 1e-5
NEG_SLOPE = 0.1          # module explicitly uses nn.LeakyReLU(negative_slope=0.1)
LANE = 128
ROW_ALIGN = 16           # bf16 packs 2 rows / sublane -> 16-row alignment


def _round_up(a, b):
    return (a + b - 1) // b * b


def _pad2(a, rows, cols, dtype):
    a = a.astype(dtype)
    pr, pc = rows - a.shape[0], cols - a.shape[1]
    if pr or pc:
        a = jnp.pad(a, ((0, pr), (0, pc)))
    return a


def _vmem_cap_bytes():
    try:
        return int(pltpu.get_tpu_info().vmem_capacity_bytes)
    except Exception:
        return 64 * 1024 * 1024   # conservative (v7x per-TC) fallback


# --------------------------------------------------------------------------
# Kernel
# --------------------------------------------------------------------------
def learning_block_kernel(
    x_ref,      # (TM, DIp)  bf16
    w1_ref,     # (DIp, Hp)  bf16
    w2_ref,     # (Hp,  Hp)  bf16
    w3_ref,     # (Hp,  DOp) bf16
    vec_ref,    # (8,   Hp)  f32 rows: b1, g1, be1, b2, g2, be2, 0, 0
    b3_ref,     # (1,   DOp) f32
    o_ref,      # (TM,  DOp) out dtype
    *,
    hidden,     # logical (un-padded) hidden dim for LayerNorm statistics
):
    hp = w1_ref.shape[1]
    vecs = vec_ref[...]
    b1, g1, be1 = vecs[0:1], vecs[1:2], vecs[2:3]
    b2, g2, be2 = vecs[3:4], vecs[4:5], vecs[5:6]

    inv_h = 1.0 / float(hidden)
    # Columns >= hidden are zero padding of h (w/b/gamma/beta padded with 0),
    # so sums already match the logical sums; only the variance needs masking
    # because (h - mean) is non-zero in padded columns.  Statically skip the
    # mask when hidden is already lane-aligned.
    if hp != hidden:
        col = jax.lax.broadcasted_iota(jnp.int32, (1, hp), 1)
        pad_mask = (col < hidden).astype(jnp.float32)
    else:
        pad_mask = None

    def norm_act(h, gamma, beta):
        mean = jnp.sum(h, axis=-1, keepdims=True) * inv_h
        c = h - mean
        sq = c * c if pad_mask is None else c * c * pad_mask
        var = jnp.sum(sq, axis=-1, keepdims=True) * inv_h
        y = c * jax.lax.rsqrt(var + LN_EPS) * gamma + beta
        # LeakyReLU(0.1): max(y, 0.1*y)  (valid because 0 < slope < 1)
        return jnp.maximum(y, NEG_SLOPE * y)

    # bf16 operands on the MXU, f32 accumulation; LN / activation in f32.
    h = jnp.dot(x_ref[...], w1_ref[...], preferred_element_type=jnp.float32) + b1
    h = norm_act(h, g1, be1)
    h = jnp.dot(h.astype(jnp.bfloat16), w2_ref[...],
                preferred_element_type=jnp.float32) + b2
    h = norm_act(h, g2, be2)
    out = jnp.dot(h.astype(jnp.bfloat16), w3_ref[...],
                  preferred_element_type=jnp.float32) + b3_ref[...]
    o_ref[...] = out.astype(o_ref.dtype)


# --------------------------------------------------------------------------
# One-time parameter preparation (hoisted out of the per-forward path)
# --------------------------------------------------------------------------
def prepare_params(params):
    """Pad/cast the LearningBlock parameters once; reuse across forward calls."""
    dim_in, hidden = params["w1"].shape
    dim_out = params["w3"].shape[1]
    dip, hp, dop = (_round_up(d, LANE) for d in (dim_in, hidden, dim_out))

    w1 = _pad2(params["w1"], dip, hp, jnp.bfloat16)
    w2 = _pad2(params["w2"], hp, hp, jnp.bfloat16)
    w3 = _pad2(params["w3"], hp, dop, jnp.bfloat16)

    # Consolidate the six tiny (1,H) params into one (8,Hp) slab.  Padded
    # columns are ZERO so padded activations stay exactly zero.
    vecs = jnp.zeros((8, hp), jnp.float32)
    for row, name in enumerate(("b1", "g1", "be1", "b2", "g2", "be2")):
        vecs = vecs.at[row, :hidden].set(
            params[name].reshape(-1).astype(jnp.float32))
    b3 = _pad2(params["b3"].reshape(1, -1), 1, dop, jnp.float32)

    return dict(w1=w1, w2=w2, w3=w3, vecs=vecs, b3=b3,
                dim_in=dim_in, hidden=hidden, dim_out=dim_out,
                dip=dip, hp=hp, dop=dop)


# --------------------------------------------------------------------------
# Forward
# --------------------------------------------------------------------------
def learning_block(x, prep, *, row_tile=None, out_dtype=None):
    """Fused forward pass.  `prep` comes from prepare_params() (call it once)."""
    n, dim_in = x.shape
    assert dim_in == prep["dim_in"]
    hidden, dim_out = prep["hidden"], prep["dim_out"]
    dip, hp, dop = prep["dip"], prep["hp"], prep["dop"]
    out_dtype = out_dtype or x.dtype          # bf16 output optional via flag

    # Row tile: big enough to reach the HBM roofline, multiple of 16 rows,
    # never larger than what the input needs.
    if row_tile is None:
        row_tile = 512 if hp <= 512 else 256
    row_tile = min(row_tile,
                   _round_up(max(pl.cdiv(n, 2), ROW_ALIGN), ROW_ALIGN))
    row_tile = _round_up(row_tile, ROW_ALIGN)
    # EVEN number of grid steps (>= 2): clean dual-TC sharding on v7x,
    # software pipelining everywhere.
    n_pad = max(_round_up(n, 2 * row_tile), 2 * row_tile)
    grid = (n_pad // row_tile,)

    # Pad + bf16-cast x in one wrapper pass (halves streamed bytes vs f32).
    xp = _pad2(x, n_pad, dip, jnp.bfloat16)

    out_itemsize = jnp.dtype(out_dtype).itemsize

    def vmem_budget(weight_buffers):
        w_bytes = weight_buffers * (dip * hp + hp * hp + hp * dop) * 2   # bf16
        io_bytes = 2 * row_tile * (dip * 2 + dop * out_itemsize)         # 2-buf
        small_bytes = (8 * hp + dop) * 4
        live_bytes = 4 * row_tile * hp * 4                               # f32 temps
        need = int((w_bytes + io_bytes + small_bytes + live_bytes) * 1.3)
        cap = max(_vmem_cap_bytes() - 8 * 1024 * 1024, 16 * 1024 * 1024)
        return min(max(need, min(32 * 1024 * 1024, cap)), cap)

    kernel = functools.partial(learning_block_kernel, hidden=hidden)
    out_shape = jax.ShapeDtypeStruct((n_pad, dop), out_dtype)

    def build(single_buffer_weights):
        extra = (dict(pipeline_mode=pl.Buffered(1))
                 if single_buffer_weights else {})

        def const_spec(shape):
            # Constant block index -> one VMEM buffer suffices for the weights.
            return pl.BlockSpec(shape, lambda i: (0, 0), **extra)

        def row_spec(cols):
            return pl.BlockSpec((row_tile, cols), lambda i: (i, 0))

        in_specs = [
            row_spec(dip),            # x (bf16)
            const_spec((dip, hp)),    # w1 (bf16)
            const_spec((hp, hp)),     # w2 (bf16)
            const_spec((hp, dop)),    # w3 (bf16)
            const_spec((8, hp)),      # b1,g1,be1,b2,g2,be2
            const_spec((1, dop)),     # b3
        ]
        return pl.pallas_call(
            kernel,
            out_shape=out_shape,
            grid_spec=pltpu.PrefetchScalarGridSpec(
                num_scalar_prefetch=0,
                grid=grid,
                in_specs=in_specs,
                out_specs=row_spec(dop),
            ),
            compiler_params=pltpu.CompilerParams(
                dimension_semantics=("parallel",),
                vmem_limit_bytes=vmem_budget(1 if single_buffer_weights else 2),
            ),
        )

    try:
        run = build(True)
    except TypeError:
        # jax build without BlockSpec.pipeline_mode support: weights are
        # double-buffered, budget recomputed accordingly.
        run = build(False)

    out = run(xp, prep["w1"], prep["w2"], prep["w3"], prep["vecs"], prep["b3"])
    return out[:n, :dim_out]


# --------------------------------------------------------------------------
# Parameter init (mirrors nn.Linear / nn.LayerNorm defaults) and reference
# --------------------------------------------------------------------------
def init_params(key, dim_in, hidden_dim, dim_out):
    ks = jax.random.split(key, 6)

    def linear(kw, kb, fan_in, fan_out):
        bound = 1.0 / jnp.sqrt(fan_in)
        w = jax.random.uniform(kw, (fan_in, fan_out), jnp.float32, -bound, bound)
        b = jax.random.uniform(kb, (1, fan_out), jnp.float32, -bound, bound)
        return w, b

    w1, b1 = linear(ks[0], ks[1], dim_in, hidden_dim)
    w2, b2 = linear(ks[2], ks[3], hidden_dim, hidden_dim)
    w3, b3 = linear(ks[4], ks[5], hidden_dim, dim_out)
    return dict(
        w1=w1, b1=b1,
        g1=jnp.ones((1, hidden_dim), jnp.float32),
        be1=jnp.zeros((1, hidden_dim), jnp.float32),
        w2=w2, b2=b2,
        g2=jnp.ones((1, hidden_dim), jnp.float32),
        be2=jnp.zeros((1, hidden_dim), jnp.float32),
        w3=w3, b3=b3,
    )


def reference_forward(x, p):
    """Pure-JAX reference with the same bf16-operand / f32-accumulate matmuls.
    (The original PyTorch module is all-f32; bf16 MXU operands give ~1e-2
    parity. For tighter parity, cast weights/x to f32 before the dots.)"""
    def ln(h, g, b):
        m = jnp.mean(h, axis=-1, keepdims=True)
        v = jnp.mean((h - m) ** 2, axis=-1, keepdims=True)
        return (h - m) / jnp.sqrt(v + LN_EPS) * g + b

    def lrelu(h):
        return jnp.where(h >= 0, h, NEG_SLOPE * h)

    def dot_bf16(a, w):
        return jnp.dot(a.astype(jnp.bfloat16), w.astype(jnp.bfloat16),
                       preferred_element_type=jnp.float32)

    h = lrelu(ln(dot_bf16(x, p["w1"]) + p["b1"], p["g1"], p["be1"]))
    h = lrelu(ln(dot_bf16(h, p["w2"]) + p["b2"], p["g2"], p["be2"]))
    return dot_bf16(h, p["w3"]) + p["b3"]


if __name__ == "__main__":
    key = jax.random.PRNGKey(0)
    k_x, k_p = jax.random.split(key)

    N, DIM_IN, HIDDEN, DIM_OUT = 8, 16, 32, 16
    x = jax.random.normal(k_x, (N, DIM_IN), jnp.float32)
    params = init_params(k_p, DIM_IN, HIDDEN, DIM_OUT)

    prep = prepare_params(params)          # one-time pad/cast, reused per call
    out = jax.block_until_ready(learning_block(x, prep))
    ref = reference_forward(x, params)

    assert out.shape == (N, DIM_OUT)
    max_err = float(jnp.max(jnp.abs(out - ref)))
    assert jnp.allclose(out, ref, atol=1e-2, rtol=1e-2), f"max err {max_err}"
    print("KERNEL_OK")
</pallas_src>

<mosaic_0001>
module attributes {stable_mosaic.version = 11 : i64} {
  func.func @learning_block_kernel(%arg0: i32, %arg1: memref<16x128xbf16, #tpu.memory_space<vmem>>, %arg2: memref<128x128xbf16, #tpu.memory_space<vmem>>, %arg3: memref<128x128xbf16, #tpu.memory_space<vmem>>, %arg4: memref<128x128xbf16, #tpu.memory_space<vmem>>, %arg5: memref<8x128xf32, #tpu.memory_space<vmem>>, %arg6: memref<1x128xf32, #tpu.memory_space<vmem>>, %arg7: memref<16x128xf32, #tpu.memory_space<vmem>>) attributes {dimension_semantics = [#tpu.dimension_semantics<parallel>], iteration_bounds = array<i64: 2>, scalar_prefetch = 0 : i64, scratch_operands = 0 : i64, tpu.core_type = #tpu.core_type<tc>, window_params = [{transform_indices = @transform_0, window_bounds = array<i64: 16, 128>}, {pipeline_mode = #tpu.pipeline_mode<synchronous>, transform_indices = @transform_1, window_bounds = array<i64: 128, 128>}, {pipeline_mode = #tpu.pipeline_mode<synchronous>, transform_indices = @transform_2, window_bounds = array<i64: 128, 128>}, {pipeline_mode = #tpu.pipeline_mode<synchronous>, transform_indices = @transform_3, window_bounds = array<i64: 128, 128>}, {pipeline_mode = #tpu.pipeline_mode<synchronous>, transform_indices = @transform_4, window_bounds = array<i64: 8, 128>}, {pipeline_mode = #tpu.pipeline_mode<synchronous>, transform_indices = @transform_5, window_bounds = array<i64: 1, 128>}, {transform_indices = @transform_6, window_bounds = array<i64: 16, 128>}]} {
    %c0 = arith.constant 0 : index
    %c0_0 = arith.constant 0 : index
    %0 = vector.load %arg5[%c0, %c0_0] : memref<8x128xf32, #tpu.memory_space<vmem>>, vector<8x128xf32>
    %1 = vector.extract_strided_slice %0 {offsets = [0, 0], sizes = [1, 128], strides = [1, 1]} : vector<8x128xf32> to vector<1x128xf32>
    %2 = vector.extract_strided_slice %0 {offsets = [1, 0], sizes = [1, 128], strides = [1, 1]} : vector<8x128xf32> to vector<1x128xf32>
    %3 = vector.extract_strided_slice %0 {offsets = [2, 0], sizes = [1, 128], strides = [1, 1]} : vector<8x128xf32> to vector<1x128xf32>
    %4 = vector.extract_strided_slice %0 {offsets = [3, 0], sizes = [1, 128], strides = [1, 1]} : vector<8x128xf32> to vector<1x128xf32>
    %5 = vector.extract_strided_slice %0 {offsets = [4, 0], sizes = [1, 128], strides = [1, 1]} : vector<8x128xf32> to vector<1x128xf32>
    %6 = vector.extract_strided_slice %0 {offsets = [5, 0], sizes = [1, 128], strides = [1, 1]} : vector<8x128xf32> to vector<1x128xf32>
    %7 = tpu.iota {dimensions = array<i32: 1>} : vector<1x128xi32>
    %c32_i32 = arith.constant 32 : i32
    %8 = vector.broadcast %c32_i32 : i32 to vector<1x128xi32>
    %9 = arith.cmpi slt, %7, %8 : vector<1x128xi32>
    %10 = arith.extui %9 : vector<1x128xi1> to vector<1x128xi32>
    %11 = arith.sitofp %10 : vector<1x128xi32> to vector<1x128xf32>
    %c0_1 = arith.constant 0 : index
    %c0_2 = arith.constant 0 : index
    %12 = vector.load %arg1[%c0_1, %c0_2] : memref<16x128xbf16, #tpu.memory_space<vmem>>, vector<16x128xbf16>
    %c0_3 = arith.constant 0 : index
    %c0_4 = arith.constant 0 : index
    %13 = vector.load %arg2[%c0_3, %c0_4] : memref<128x128xbf16, #tpu.memory_space<vmem>>, vector<128x128xbf16>
    %cst = arith.constant dense<0.000000e+00> : vector<16x128xf32>
    %14 = tpu.matmul %12, %13, %cst {dimension_numbers = #tpu.dot_dimension_numbers<[1], [0], [0], [1], [0, 0, 1, 1], [], []>} : vector<16x128xbf16>, vector<128x128xbf16>, vector<16x128xf32> -> vector<16x128xf32>
    %15 = vector.broadcast %1 : vector<1x128xf32> to vector<16x128xf32>
    %16 = arith.addf %14, %15 : vector<16x128xf32>
    %cst_5 = arith.constant dense<0.000000e+00> : vector<16xf32>
    %17 = vector.multi_reduction <add>, %16, %cst_5 [1] : vector<16x128xf32> to vector<16xf32>
    %18 = vector.shape_cast %17 : vector<16xf32> to vector<16x1xf32>
    %cst_6 = arith.constant 3.125000e-02 : f32
    %19 = vector.broadcast %cst_6 : f32 to vector<16x1xf32>
    %20 = arith.mulf %18, %19 : vector<16x1xf32>
    %21 = vector.broadcast %20 : vector<16x1xf32> to vector<16x128xf32>
    %22 = arith.subf %16, %21 : vector<16x128xf32>
    %23 = arith.mulf %22, %22 : vector<16x128xf32>
    %24 = vector.broadcast %11 : vector<1x128xf32> to vector<16x128xf32>
    %25 = arith.mulf %23, %24 : vector<16x128xf32>
    %cst_7 = arith.constant dense<0.000000e+00> : vector<16xf32>
    %26 = vector.multi_reduction <add>, %25, %cst_7 [1] : vector<16x128xf32> to vector<16xf32>
    %27 = vector.shape_cast %26 : vector<16xf32> to vector<16x1xf32>
    %cst_8 = arith.constant 3.125000e-02 : f32
    %28 = vector.broadcast %cst_8 : f32 to vector<16x1xf32>
    %29 = arith.mulf %27, %28 : vector<16x1xf32>
    %cst_9 = arith.constant 9.99999974E-6 : f32
    %30 = vector.broadcast %cst_9 : f32 to vector<16x1xf32>
    %31 = arith.addf %29, %30 : vector<16x1xf32>
    %32 = math.rsqrt %31 : vector<16x1xf32>
    %33 = vector.broadcast %32 : vector<16x1xf32> to vector<16x128xf32>
    %34 = arith.mulf %22, %33 : vector<16x128xf32>
    %35 = vector.broadcast %2 : vector<1x128xf32> to vector<16x128xf32>
    %36 = arith.mulf %34, %35 : vector<16x128xf32>
    %37 = vector.broadcast %3 : vector<1x128xf32> to vector<16x128xf32>
    %38 = arith.addf %36, %37 : vector<16x128xf32>
    %cst_10 = arith.constant 1.000000e-01 : f32
    %39 = vector.broadcast %cst_10 : f32 to vector<16x128xf32>
    %40 = arith.mulf %39, %38 : vector<16x128xf32>
    %41 = arith.maximumf %38, %40 : vector<16x128xf32>
    %42 = arith.truncf %41 : vector<16x128xf32> to vector<16x128xbf16>
    %c0_11 = arith.constant 0 : index
    %c0_12 = arith.constant 0 : index
    %43 = vector.load %arg3[%c0_11, %c0_12] : memref<128x128xbf16, #tpu.memory_space<vmem>>, vector<128x128xbf16>
    %cst_13 = arith.constant dense<0.000000e+00> : vector<16x128xf32>
    %44 = tpu.matmul %42, %43, %cst_13 {dimension_numbers = #tpu.dot_dimension_numbers<[1], [0], [0], [1], [0, 0, 1, 1], [], []>} : vector<16x128xbf16>, vector<128x128xbf16>, vector<16x128xf32> -> vector<16x128xf32>
    %45 = vector.broadcast %4 : vector<1x128xf32> to vector<16x128xf32>
    %46 = arith.addf %44, %45 : vector<16x128xf32>
    %cst_14 = arith.constant dense<0.000000e+00> : vector<16xf32>
    %47 = vector.multi_reduction <add>, %46, %cst_14 [1] : vector<16x128xf32> to vector<16xf32>
    %48 = vector.shape_cast %47 : vector<16xf32> to vector<16x1xf32>
    %cst_15 = arith.constant 3.125000e-02 : f32
    %49 = vector.broadcast %cst_15 : f32 to vector<16x1xf32>
    %50 = arith.mulf %48, %49 : vector<16x1xf32>
    %51 = vector.broadcast %50 : vector<16x1xf32> to vector<16x128xf32>
    %52 = arith.subf %46, %51 : vector<16x128xf32>
    %53 = arith.mulf %52, %52 : vector<16x128xf32>
    %54 = vector.broadcast %11 : vector<1x128xf32> to vector<16x128xf32>
    %55 = arith.mulf %53, %54 : vector<16x128xf32>
    %cst_16 = arith.constant dense<0.000000e+00> : vector<16xf32>
    %56 = vector.multi_reduction <add>, %55, %cst_16 [1] : vector<16x128xf32> to vector<16xf32>
    %57 = vector.shape_cast %56 : vector<16xf32> to vector<16x1xf32>
    %cst_17 = arith.constant 3.125000e-02 : f32
    %58 = vector.broadcast %cst_17 : f32 to vector<16x1xf32>
    %59 = arith.mulf %57, %58 : vector<16x1xf32>
    %cst_18 = arith.constant 9.99999974E-6 : f32
    %60 = vector.broadcast %cst_18 : f32 to vector<16x1xf32>
    %61 = arith.addf %59, %60 : vector<16x1xf32>
    %62 = math.rsqrt %61 : vector<16x1xf32>
    %63 = vector.broadcast %62 : vector<16x1xf32> to vector<16x128xf32>
    %64 = arith.mulf %52, %63 : vector<16x128xf32>
    %65 = vector.broadcast %5 : vector<1x128xf32> to vector<16x128xf32>
    %66 = arith.mulf %64, %65 : vector<16x128xf32>
    %67 = vector.broadcast %6 : vector<1x128xf32> to vector<16x128xf32>
    %68 = arith.addf %66, %67 : vector<16x128xf32>
    %cst_19 = arith.constant 1.000000e-01 : f32
    %69 = vector.broadcast %cst_19 : f32 to vector<16x128xf32>
    %70 = arith.mulf %69, %68 : vector<16x128xf32>
    %71 = arith.maximumf %68, %70 : vector<16x128xf32>
    %72 = arith.truncf %71 : vector<16x128xf32> to vector<16x128xbf16>
    %c0_20 = arith.constant 0 : index
    %c0_21 = arith.constant 0 : index
    %73 = vector.load %arg4[%c0_20, %c0_21] : memref<128x128xbf16, #tpu.memory_space<vmem>>, vector<128x128xbf16>
    %cst_22 = arith.constant dense<0.000000e+00> : vector<16x128xf32>
    %74 = tpu.matmul %72, %73, %cst_22 {dimension_numbers = #tpu.dot_dimension_numbers<[1], [0], [0], [1], [0, 0, 1, 1], [], []>} : vector<16x128xbf16>, vector<128x128xbf16>, vector<16x128xf32> -> vector<16x128xf32>
    %c0_23 = arith.constant 0 : index
    %c0_24 = arith.constant 0 : index
    %75 = vector.load %arg6[%c0_23, %c0_24] : memref<1x128xf32, #tpu.memory_space<vmem>>, vector<1x128xf32>
    %76 = vector.broadcast %75 : vector<1x128xf32> to vector<16x128xf32>
    %77 = arith.addf %74, %76 : vector<16x128xf32>
    %c0_25 = arith.constant 0 : index
    %c0_26 = arith.constant 0 : index
    %78 = vector.load %arg7[%c0_25, %c0_26] : memref<16x128xf32, #tpu.memory_space<vmem>>, vector<16x128xf32>
    tpu.vector_store %arg7[%c0_25, %c0_26], %77 {strides = array<i32>} : memref<16x128xf32, #tpu.memory_space<vmem>>, vector<16x128xf32>,
    return
  }
  func.func @transform_0(%arg0: i32) -> (i32, i32) {
    %c0_i32 = arith.constant 0 : i32
    %c0_i32_0 = arith.constant 0 : i32
    return %arg0, %c0_i32 : i32, i32
  }
  func.func @transform_1(%arg0: i32) -> (i32, i32) {
    %c0_i32 = arith.constant 0 : i32
    %c0_i32_0 = arith.constant 0 : i32
    %c0_i32_1 = arith.constant 0 : i32
    return %c0_i32, %c0_i32_0 : i32, i32
  }
  func.func @transform_2(%arg0: i32) -> (i32, i32) {
    %c0_i32 = arith.constant 0 : i32
    %c0_i32_0 = arith.constant 0 : i32
    %c0_i32_1 = arith.constant 0 : i32
    return %c0_i32, %c0_i32_0 : i32, i32
  }
  func.func @transform_3(%arg0: i32) -> (i32, i32) {
    %c0_i32 = arith.constant 0 : i32
    %c0_i32_0 = arith.constant 0 : i32
    %c0_i32_1 = arith.constant 0 : i32
    return %c0_i32, %c0_i32_0 : i32, i32
  }
  func.func @transform_4(%arg0: i32) -> (i32, i32) {
    %c0_i32 = arith.constant 0 : i32
    %c0_i32_0 = arith.constant 0 : i32
    %c0_i32_1 = arith.constant 0 : i32
    return %c0_i32, %c0_i32_0 : i32, i32
  }
  func.func @transform_5(%arg0: i32) -> (i32, i32) {
    %c0_i32 = arith.constant 0 : i32
    %c0_i32_0 = arith.constant 0 : i32
    %c0_i32_1 = arith.constant 0 : i32
    return %c0_i32, %c0_i32_0 : i32, i32
  }
  func.func @transform_6(%arg0: i32) -> (i32, i32) {
    %c0_i32 = arith.constant 0 : i32
    %c0_i32_0 = arith.constant 0 : i32
    return %arg0, %c0_i32 : i32, i32
  }
}

</mosaic_0001>

<bundles_post_ra>
// kernel: tpu_custom_call.1
= control target key start
LH: loop header
LB: loop body
LE: loop exit
PB: predicated region body
PF: predicated region fallthrough
CT: control target
= control target key end

     0   :  { %11 = vsyncpa [#allocation3], 0  ;;  %s1683_s0 = inlined_call_operand.hbm [shape: bf16[32,128], index: 0, kind: input, shape index: {}]   ;;  %s1684_s1 = inlined_call_operand.hbm [shape: bf16[128,128], index: 1, kind: input, shape index: {}]   ;;  %s1685_s2 = inlined_call_operand.hbm [shape: bf16[128,128], index: 2, kind: input, shape index: {}]   ;;  %s1686_s3 = inlined_call_operand.hbm [shape: bf16[128,128], index: 3, kind: input, shape index: {}]   ;;  %s1687_s4 = inlined_call_operand.vmem [shape: f32[8,128], index: 4, kind: input, shape index: {}]   ;;  %s1688_s5 = inlined_call_operand.vmem [shape: f32[1,128], index: 5, kind: input, shape index: {}]   ;;  %s1689_s6 = inlined_call_operand.hbm [shape: f32[32,128], index: 6, kind: output, shape index: {}]  }
   0x1   :  { %13 = vsyncpa [#allocation3 + $0x1], 0 }
   0x2   :  { %14 = vsyncpa [#allocation6], 0 }
   0x3   :  { %15 = vsyncpa [#allocation9], 0 }
   0x4   :  { %16 = vsyncpa [#allocation4], 0 }
   0x5   :  { %18 = vsyncpa [#allocation4 + $0x1], 0  ;;  %s1349_s21 = smov 0   ;;  %s1351_s22 = smov 0  }
   0x6   :  { %s1353_s23 = smov 0   ;;  %s1355_s24 = smov 0  }
   0x7 LB: > { %s1370_s25 = sadd.s32 4294967295, %s1301_s24   ;;  %s861_s26 = sadd.s32 4294967294, %s1301_s24   ;;  %s1301_s24 = sphi %s1355_s24, %s1712_s24   ;;  %s1297_s23 = sphi %s1353_s23, %s1711_s23   ;;  %s1293_s22 = sphi %s1351_s22, %s1710_s22   ;;  %s1289_s21 = sphi %s1349_s21, %s1709_s21  }
   0x8   : > { %p44_p0 = scmp.ne.s32.totalorder %s1293_s22, %s1289_s21  ;;  %p1690_p1 = scmp.eq.s32.totalorder %s1370_s25, 0 }
   0x9   : > { %p179_p3 = scmp.eq.s32.totalorder %s861_s26, 1  ;;  %p862_p5 = scmp.ge.s32.totalorder %s1301_s24, 1 }
   0xa   : > { %p1379_p4 = por %p1690_p1, %p44_p0  ;;  %p186_p7 = scmp.lt.s32.totalorder %s1301_s24, 3 }
   0xb   : > { %p1384_p6 = por %p179_p3, %p44_p0  ;;  %s1303_s30 = smov [#allocation5]  }
   0xc   : > { %s1693_s27 = scalar_select %p1379_p4, 1, 0 }
   0xd   : > { %s1694_s28 = scalar_select %p1384_p6, 1, 0 }
   0xe   : > { %p1389_p8 = pnand %p862_p5, %p186_p7  ;;  %s198_s7 = sshll.u32 %s1303_s30, 4  ;;  %s1393_s7 = int_to_ptr.vmem [resolvable:$true] %s198_s7 }
   0xf   : > { %s1304_s9 = smov [#allocation7]   ;;  %s1305_s11 = smov [#allocation8]  }
  0x10   : > { %s1695_s29 = scalar_select %p1389_p8, 1, 0 }
  0x11   : > { %p1013_p9 = pneg %p1389_p8  ;;  %s211_s10 = sshll.u32 %s1304_s9, 4  ;;  %s1404_s10 = int_to_ptr.vmem [resolvable:$true] %s211_s10 }
  0x12   : > { %s1406_s12 = sshll.u32 %s1305_s11, 4  ;;  %s1113_s15 = scalar_lea.hbm %s1684_s1, 1024  ;;  %s225_s12 = int_to_ptr.vmem [resolvable:$true] %s1406_s12 }
  0x13   : > { %p1400_p11 = pnand %p1013_p9, %p1690_p1  ;;  %p1114_p12 = scmp.ne.s32.totalorder %s1684_s1, %s1113_s15 }
  0x14   : > { %p1120_p5 = scmp.lt.u32.totalorder %s1113_s15, %s1684_s1 }
  0x15   : > { %p1416_p13 = pneg %p1400_p11 }
  0x17   : > { %p1116_p0 = pnand %p1416_p13, %p1114_p12 }
  0x19   : > { %p1117_p3 = pneg %p1116_p0 }
  0x1b   : > { %p1122_p7 = pnand %p1120_p5, %p1117_p3 }
  0x1d   : > { %1125 = shalt.err (!%p1122_p7)
}
  0x1e   : > { %s1126_s26 = scalar_lea.vmem %s1393_s7, 1024  ;;  %p1134_p2 = scmp.lt.s32.totalorder %s1393_s7, %s1393_s7 }
  0x1f   : > { %p1127_p9 = scmp.ne.s32.totalorder %s1393_s7, %s1126_s26  ;;  %p1135_p6 = scmp.lt.s32.totalorder %s1126_s26, %s1126_s26 }
  0x21   : > { %p1129_p10 = pnand %p1127_p9, %p1416_p13  ;;  %p1136_p12 = por %p1135_p6, %p1134_p2 }
  0x23   : > { %p1130_p1 = pneg %p1129_p10 }
  0x25   : > { %p1137_p0 = pnand %p1136_p12, %p1130_p1 }
  0x27   : > { %1140 = shalt.err (!%p1137_p0)
}
  0x28   : > { %s1306_s30 = smov 64   ;;  %s1307_s9 = smov 4  }
  0x29   : > { %1016 = dma.hbm_to_vmem [thread:$0]  (!%p1400_p11), %s1684_s1, 1024, %s1393_s7, [#allocation6], %s1306_s30, %s1306_s30, %s1307_s9  }
  0x2a   : > { %s1141_s16 = scalar_lea.hbm %s1685_s2, 1024 }
  0x2b   : > { %p1142_p1 = scmp.ne.s32.totalorder %s1685_s2, %s1141_s16  ;;  %p1148_p10 = scmp.lt.u32.totalorder %s1141_s16, %s1685_s2 }
  0x2d   : > { %p1144_p2 = pnand %p1142_p1, %p1416_p13 }
  0x2f   : > { %p1145_p6 = pneg %p1144_p2 }
  0x31   : > { %p1150_p3 = pnand %p1148_p10, %p1145_p6 }
  0x33   : > { %1153 = shalt.err (!%p1150_p3)
}
  0x34   : > { %s1154_s7 = scalar_lea.vmem %s1404_s10, 1024  ;;  %p1162_p12 = scmp.lt.s32.totalorder %s1404_s10, %s1404_s10 }
  0x35   : > { %p1155_p5 = scmp.ne.s32.totalorder %s1404_s10, %s1154_s7  ;;  %p1163_p0 = scmp.lt.s32.totalorder %s1154_s7, %s1154_s7 }
  0x37   : > { %p1157_p7 = pnand %p1155_p5, %p1416_p13  ;;  %p1164_p1 = por %p1163_p0, %p1162_p12 }
  0x39   : > { %p1158_p9 = pneg %p1157_p7 }
  0x3b   : > { %p1165_p2 = pnand %p1164_p1, %p1158_p9 }
  0x3d   : > { %1168 = shalt.err (!%p1165_p2)
}
  0x3e   : > { %1019 = dma.hbm_to_vmem [thread:$0]  (!%p1400_p11), %s1685_s2, 1024, %s1404_s10, [#allocation6], %s1306_s30, %s1306_s30, %s1307_s9  }
  0x3f   : > { %s1169_s16 = scalar_lea.hbm %s1686_s3, 1024 }
  0x40   : > { %p1170_p6 = scmp.ne.s32.totalorder %s1686_s3, %s1169_s16  ;;  %p1176_p5 = scmp.lt.u32.totalorder %s1169_s16, %s1686_s3 }
  0x42   : > { %p1172_p10 = pnand %p1170_p6, %p1416_p13 }
  0x44   : > { %p1173_p3 = pneg %p1172_p10 }
  0x46   : > { %p1178_p7 = pnand %p1176_p5, %p1173_p3 }
  0x48   : > { %1181 = shalt.err (!%p1178_p7)
}
  0x49   : > { %s1182_s7 = scalar_lea.vmem %s225_s12, 1024  ;;  %p1190_p1 = scmp.lt.s32.totalorder %s225_s12, %s225_s12 }
  0x4a   : > { %p1183_p9 = scmp.ne.s32.totalorder %s225_s12, %s1182_s7  ;;  %p1191_p2 = scmp.lt.s32.totalorder %s1182_s7, %s1182_s7 }
  0x4c   : > { %p1185_p12 = pnand %p1183_p9, %p1416_p13  ;;  %p1192_p4 = por %p1191_p2, %p1190_p1 }
  0x4e   : > { %p1186_p0 = pneg %p1185_p12 }
  0x50   : > { %p1193_p8 = pnand %p1192_p4, %p1186_p0 }
  0x52   : > { %1196 = shalt.err (!%p1193_p8)
}
  0x53   : > { %1022 = dma.hbm_to_vmem [thread:$0]  (!%p1400_p11), %s1686_s3, 1024, %s225_s12, [#allocation9], %s1306_s30, %s1306_s30, %s1307_s9  }
  0x54   : > { %s1489_s18 = sadd.s32 1, %s1301_s24   ;;  %s31_s13 = sadd.s32 1, %s1297_s23 }
  0x55   : > { %s28_s8 = ssub.s32 %s1301_s24, %s1489_s18  ;;  %p38_p8 = scmp.ne.s32.totalorder %s1297_s23, %s1293_s22 }
  0x56   : > { %p29_p4 = scmp.eq.s32.totalorder %s28_s8, 0  ;;  %p39_p13 = scmp.eq.s32.totalorder %s1301_s24, 0 }
  0x57   : > { %p1034_p6 = scmp.lt.s32.totalorder %s1301_s24, 2  ;;  %p1698_p3 = scmp.eq.s32.totalorder %s1370_s25, 1 }
  0x58   : > { %s1499_s14 = scalar_select %p29_p4, %s1297_s23, %s31_s13  }
  0x59   : > { %p40_p10 = por %p39_p13, %p38_p8  ;;  %p1503_p5 = por %p1698_p3, %p38_p8 }
  0x5a   : > { %s244_s16 = sand.u32 1, %s1297_s23   ;;  %s908_s17 = sshll.u32 %s1301_s24, 7 }
  0x5b   : > { %s867_s12 = sshll.u32 %s244_s16, 3  ;;  %s1512_s26 = scalar_lea.hbm %s1683_s0, %s908_s17 }
  0x5c   : > { %s248_s7 = scalar_lea.vmem [#allocation2], %s867_s12  ;;  %p1514_p11 = pnand %p1034_p6, %p40_p10 }
  0x5d   : > { %s255_s10 = sshll.u32 %s248_s7, 4  ;;  %s1520_s8 = scalar_lea.sflag [#allocation3], %s244_s16  ;;  %s1518_s10 = int_to_ptr.vmem [resolvable:$true] %s255_s10 }
  0x5e   : > { %s1197_s13 = scalar_lea.hbm %s1512_s26, 128  ;;  %p1199_p9 = pneg %p1514_p11 }
  0x5f   : > { %p1198_p7 = scmp.ne.s32.totalorder %s1512_s26, %s1197_s13  ;;  %s1202_s19 = scalar_lea.hbm %s1683_s0, 256 }
  0x60   : > { %p1203_p1 = scmp.lt.u32.totalorder %s1512_s26, %s1683_s0  ;;  %p1204_p2 = scmp.lt.u32.totalorder %s1202_s19, %s1197_s13 }
  0x61   : > { %p1200_p12 = pnand %p1199_p9, %p1198_p7  ;;  %p1206_p8 = scmp.lt.u32.totalorder %s1197_s13, %s1512_s26 }
  0x62   : > { %p1205_p4 = por %p1204_p2, %p1203_p1 }
  0x63   : > { %p1201_p0 = pneg %p1200_p12 }
  0x64   : > { %p1207_p13 = por %p1206_p8, %p1205_p4 }
  0x66   : > { %p1208_p6 = pnand %p1207_p13, %p1201_p0 }
  0x68   : > { %1211 = shalt.err (!%p1208_p6)
}
  0x69   : > { %s1212_s16 = scalar_lea.vmem %s1518_s10, 128  ;;  %s1308_s17 = smov [#allocation2]  }
  0x6a   : > { %p1213_p10 = scmp.ne.s32.totalorder %s1518_s10, %s1212_s16  ;;  %s1217_s12 = sshll.u32 %s1308_s17, 4  ;;  %s1218_s12 = int_to_ptr.vmem [resolvable:$false] %s1217_s12 }
  0x6b   : > { %s1219_s20 = scalar_lea.vmem %s1218_s12, 256  ;;  %p1220_p12 = scmp.lt.s32.totalorder %s1518_s10, %s1218_s12 }
  0x6c   : > { %p1215_p3 = pnand %p1213_p10, %p1199_p9  ;;  %p1221_p1 = scmp.lt.s32.totalorder %s1219_s20, %s1212_s16 }
  0x6e   : > { %p1216_p7 = pneg %p1215_p3  ;;  %p1222_p2 = por %p1221_p1, %p1220_p12 }
  0x70   : > { %p1223_p4 = pnand %p1222_p2, %p1216_p7 }
  0x72   : > { %1226 = shalt.err (!%p1223_p4)
}
  0x73   : > { %1026 = dma.hbm_to_vmem [thread:$0]  (!%p1514_p11), %s1512_s26, 128, %s1518_s10, %s1520_s8, %s1306_s30, %s1306_s30, %s1307_s9  }
  0x74   : > { %p1701_p9 = scmp.ne.s32.totalorder %s1695_s29, 0 }
  0x75   : > { %s1554_s13 = sand.u32 (!%p1701_p9), 1, %s1293_s22   ;;  %p1702_p0 = scmp.ne.s32.totalorder (!%p1701_p9), %s1693_s27, 0 }
  0x76   : > { %267 = sbr.rel (%p1701_p9) target bundleno = 1470 (0x5be), region = 44  ;;  %s871_s19 = sshll.u32 (!%p1701_p9), %s1554_s13, 3 }
  0x77   : > { %s270_s7 = scalar_lea.sflag (!%p1701_p9), [#allocation3], %s1554_s13  ;;  %s1558_s16 = scalar_lea.vmem (!%p1701_p9), [#allocation2], %s871_s19 }
  0x7d   : > { %1272 = dma.done.wait (%p1702_p0), %s270_s7, 128  }
  0x7e   : > { %1274 = vsyncadd (%p1702_p0), %s270_s7, 4294967168  ;;  %p1703_p11 = scmp.eq.s32.totalorder %s1370_s25, 0 }
  0x80   : > { %1276 = dma.done.wait (%p1703_p11), [#allocation6], 2048   ;;  %p1704_p8 = pmov %p1703_p11 }
  0x82   : > { %1278 = vsyncadd (%p1704_p8), [#allocation6], 4294965248  ;;  %p1705_p13 = pmov %p1704_p8 }
  0x83   : > { %p1706_p6 = pmov %p1704_p8 }
  0x84   : > { %1280 = dma.done.wait (%p1705_p13), [#allocation9], 1024  }
  0x85   : > { %1282 = vsyncadd (%p1706_p6), [#allocation9], 4294966272  ;;  %v1309_v0 = vmov 0.0   ;;  %vm1310_vm0 = vmmov 0   ;;  %v1080_v1 = vld [vmem:[#allocation5] sm:$0xff]   ;;  %v1081_v2 = vld [vmem:[#allocation5 + $0x8] sm:$0xff]   ;;  %v318_v10 = vlaneseq }
  0x86   : > { %937 = vmatprep.subr.bf16.mxu0 %v1309_v0  ;;  %953 = vmatprep.mubr.msk.bf16.mxu0 %vm1310_vm0, %v1309_v0  ;;  %v1082_v3 = vld [vmem:[#allocation5 + $0x10] sm:$0xff]   ;;  %v1083_v4 = vld [vmem:[#allocation5 + $0x18] sm:$0xff]   ;;  %v1084_v5 = vld [vmem:[#allocation5 + $0x20] sm:$0xff]   ;;  %s875_s30 = sshll.u32 %s1554_s13, 4  ;;  %s909_s8 = sshll.u32 %s1370_s25, 8 }
  0x87   : > { %957 = vmatprep.subr.bf16.mxu1 %v1309_v0  ;;  %973 = vmatprep.mubr.msk.bf16.mxu1 %vm1310_vm0, %v1309_v0  ;;  %v1085_v6 = vld [vmem:[#allocation5 + $0x28] sm:$0xff]   ;;  %v1086_v7 = vld [vmem:[#allocation5 + $0x30] sm:$0xff]   ;;  %v1087_v8 = vld [vmem:[#allocation5 + $0x38] sm:$0xff]   ;;  %v1589_v11 = vshrl.u32 %v318_v10, 7  ;;  %v319_v21 = vand.u32 127, %v318_v10  ;;  %s313_s10 = scalar_lea.vmem [#allocation10], %s875_s30  ;;  %s1639_s20 = scalar_lea.hbm %s1689_s6, %s909_s8 }
  0x88   : > { %938 = vmatpush3.bf16.msra.mxu0 %v1080_v1  ;;  %v1088_v9 = vld [vmem:[%s1558_s16] sm:$0xff]   ;;  %v1089_v33 = vld [vmem:[#allocation7] sm:$0xff]   ;;  %v1090_v34 = vld [vmem:[#allocation7 + $0x8] sm:$0xff]   ;;  %s759_s11 = sshll.u32 %s313_s10, 4  ;;  %s746_s19 = scalar_lea.sflag [#allocation4], %s1554_s13  ;;  %s1634_s11 = int_to_ptr.vmem [resolvable:$true] %s759_s11 }
  0x89   : > { %939 = vmatprep.subr.bf16.mxu0 %v1309_v0  ;;  %v343_v12 = vsub.s32 0, %v1589_v11  ;;  %v1595_v13 = vld [vmem:[%s1687_s4] sm:$0xff]  ;;  %vm320_vm1 = vcmp.lt.s32.totalorder %v319_v21, 32  ;;  %958 = vmatpush3.bf16.msra.mxu1 %v1089_v33  ;;  %v1092_v36 = vld [vmem:[#allocation7 + $0x18] sm:$0xff]   ;;  %v1093_v37 = vld [vmem:[#allocation7 + $0x20] sm:$0xff]   ;;  %v466_v47 = vsub.s32 1, %v1589_v11 }
  0x8a   : > { %v1599_v26 = vsel %vm320_vm1, 1.0, %v1309_v0  ;;  %959 = vmatprep.subr.bf16.mxu1 %v1309_v0  ;;  %v1091_v35 = vld [vmem:[#allocation7 + $0x10] sm:$0xff]   ;;  %v1094_v38 = vld [vmem:[#allocation7 + $0x28] sm:$0xff]   ;;  %v1096_v40 = vld [vmem:[#allocation7 + $0x38] sm:$0xff]   ;;  %v472_v48 = vsub.s32 2, %v1589_v11  ;;  %v499_v1 = vsub.s32 3, %v1589_v11 }
  0x8b   : > { %v344_v14 = vrot.slane %v1595_v13, %v343_v12  ;;  %v1095_v39 = vld [vmem:[#allocation7 + $0x30] sm:$0xff]   ;;  %v467_v49 = vrot.slane %v1595_v13, %v466_v47  ;;  %s1227_s25 = scalar_lea.vmem %s1634_s11, 256  ;;  %s1311_s7 = smov [#allocation10]  }
  0x8c   : > { %940 = vmatpush3.bf16.msra.mxu0 %v1081_v2  ;;  %v473_v52 = vrot.slane %v1595_v13, %v472_v48  ;;  %v500_v2 = vrot.slane %v1595_v13, %v499_v1  ;;  %p1228_p10 = scmp.ne.s32.totalorder %s1634_s11, %s1227_s25  ;;  %s1231_s16 = sshll.u32 %s1311_s7, 4  ;;  %s1232_s16 = int_to_ptr.vmem [resolvable:$false] %s1231_s16 }
  0x8d   : > { %941 = vmatprep.subr.bf16.mxu0 %v1309_v0  ;;  %960 = vmatpush3.bf16.msra.mxu1 %v1090_v34  ;;  %s1233_s27 = scalar_lea.vmem %s1232_s16, 512  ;;  %p1234_p12 = scmp.lt.s32.totalorder %s1634_s11, %s1232_s16 }
  0x8e   : > { %961 = vmatprep.subr.bf16.mxu1 %v1309_v0  ;;  %p1229_p3 = pnand %p1228_p10, %p1503_p5  ;;  %p1235_p1 = scmp.lt.s32.totalorder %s1233_s27, %s1227_s25 }
  0x90   : > { %942 = vmatpush3.bf16.msra.mxu0 %v1082_v3  ;;  %p1230_p7 = pneg %p1229_p3  ;;  %p1236_p2 = por %p1235_p1, %p1234_p12 }
  0x91   : > { %943 = vmatprep.subr.bf16.mxu0 %v1309_v0  ;;  %962 = vmatpush3.bf16.msra.mxu1 %v1091_v35  ;;  %v616_v35 = vsub.s32 4, %v1589_v11 }
  0x92   : > { %963 = vmatprep.subr.bf16.mxu1 %v1309_v0  ;;  %p1237_p4 = pnand %p1236_p2, %p1230_p7 }
  0x94   : > { %944 = vmatpush3.bf16.msra.mxu0 %v1083_v4 }
  0x95   : > { %945 = vmatprep.subr.bf16.mxu0 %v1309_v0  ;;  %964 = vmatpush3.bf16.msra.mxu1 %v1092_v36  ;;  %v622_v36 = vsub.s32 5, %v1589_v11  ;;  %v894_v11 = vld [vmem:[%s1688_s5] ss:$0 sm:$0xff] }
  0x96   : > { %965 = vmatprep.subr.bf16.mxu1 %v1309_v0 }
  0x98   : > { %946 = vmatpush3.bf16.msra.mxu0 %v1084_v5 }
  0x99   : > { %947 = vmatprep.subr.bf16.mxu0 %v1309_v0  ;;  %966 = vmatpush3.bf16.msra.mxu1 %v1093_v37  ;;  %v617_v37 = vrot.slane %v1595_v13, %v616_v35 }
  0x9a   : > { %967 = vmatprep.subr.bf16.mxu1 %v1309_v0 }
  0x9c   : > { %948 = vmatpush3.bf16.msra.mxu0 %v1085_v6 }
  0x9d   : > { %949 = vmatprep.subr.bf16.mxu0 %v1309_v0  ;;  %968 = vmatpush3.bf16.msra.mxu1 %v1094_v38 }
  0x9e   : > { %969 = vmatprep.subr.bf16.mxu1 %v1309_v0 }
  0xa0   : > { %950 = vmatpush3.bf16.msra.mxu0 %v1086_v7 }
  0xa1   : > { %951 = vmatprep.subr.bf16.mxu0 %v1309_v0  ;;  %970 = vmatpush3.bf16.msra.mxu1 %v1095_v39 }
  0xa2   : > { %971 = vmatprep.subr.bf16.mxu1 %v1309_v0 }
  0xa4   : > { %952 = vmatpush3.bf16.msra.mxu0 %v1087_v8 }
  0xa5   : > { %977 = vmatprep.subr.bf16.mxu0 %v1309_v0  ;;  %972 = vmatpush3.bf16.msra.mxu1 %v1096_v40 }
  0xa7   : > { %954 = vmatmul.mubr.bf16.vlgmr.msra.gmra.mrb[0].mxu0 %v1088_v9  ;;  %v1097_v9 = vld [vmem:[#allocation8] sm:$0xff]  }
  0xa8   : > { %993 = vmatprep.mubr.msk.bf16.mxu0 %vm1310_vm0, %v1309_v0  ;;  %978 = vmatpush3.bf16.msra.mxu0 %v1097_v9 }
  0xa9   : > { %979 = vmatprep.subr.bf16.mxu0 %v1309_v0 }
 0x17a   : > { %v433_v15 = vpop.f32.mrb[0].mxu0 }
 0x17b   : > { %v434_v16 = vadd.f32 %v433_v15, %v344_v14  ;;  %v955_v17 = vpop.f32.mrb[1].mxu0 }
 0x17c   : > { %v436_v18 = vpop.f32.mrb[2].mxu0 }
 0x17d   : > { %v956_v19 = vpop.f32.mrb[3].mxu0  ;;  %440 = vadd.xlane.f32.xlu0 %v434_v16  ;;  %v437_v20 = vadd.f32 %v436_v18, %v344_v14 }
 0x181   : > { %442 = vadd.xlane.f32.xlu0 %v437_v20 }
 0x20a   : > { %v441_v22 = vpop.xlane.xlu0 %440 }
 0x20b   : > { %v444_v23 = vmul.f32 0.03125, %v441_v22  ;;  %v1098_v22 = vld [vmem:[#allocation8 + $0x8] sm:$0xff]  }
 0x20c   : > { %980 = vmatpush3.bf16.msra.mxu0 %v1098_v22 }
 0x20d   : > { %v446_v24 = vsub.f32 %v434_v16, %v444_v23  ;;  %981 = vmatprep.subr.bf16.mxu0 %v1309_v0  ;;  %v1099_v23 = vld [vmem:[#allocation8 + $0x10] sm:$0xff]  }
 0x20e   : > { %v443_v25 = vpop.xlane.xlu0 %442 }
 0x20f   : > { %v445_v27 = vmul.f32 0.03125, %v443_v25  ;;  %v448_v28 = vmul.f32 %v446_v24, %v446_v24  ;;  %v1101_v25 = vld [vmem:[#allocation8 + $0x20] sm:$0xff]  }
 0x210   : > { %982 = vmatpush3.bf16.msra.mxu0 %v1099_v23 }
 0x211   : > { %v447_v29 = vsub.f32 %v437_v20, %v445_v27  ;;  %v450_v30 = vmul.f32 %v1599_v26, %v448_v28  ;;  %983 = vmatprep.subr.bf16.mxu0 %v1309_v0  ;;  %v1102_v27 = vld [vmem:[#allocation8 + $0x28] sm:$0xff]   ;;  %v1104_v28 = vld [vmem:[#allocation8 + $0x38] sm:$0xff]  }
 0x213   : > { %452 = vadd.xlane.f32.xlu1 %v450_v30  ;;  %v449_v31 = vmul.f32 %v447_v29, %v447_v29 }
 0x215   : > { %v451_v32 = vmul.f32 %v1599_v26, %v449_v31 }
 0x217   : > { %454 = vadd.xlane.f32.xlu1 %v451_v32 }
 0x2a0   : > { %v453_v41 = vpop.xlane.xlu1 %452 }
 0x2a1   : > { %v456_v42 = vmul.f32 0.03125, %v453_v41 }
 0x2a3   : > { %v458_v43 = vadd.f32 1e-05, %v456_v42 }
 0x2a4   : > { %v455_v44 = vpop.xlane.xlu1 %454 }
 0x2a5   : > { %1105 = vrsqrt.f32 %v458_v43  ;;  %v457_v45 = vmul.f32 0.03125, %v455_v44 }
 0x2a7   : > { %v459_v46 = vadd.f32 1e-05, %v457_v45 }
 0x2a9   : > { %1107 = vrsqrt.f32 %v459_v46 }
 0x2af   : > { %v1106_v50 = vpop.eup %1105 }
 0x2b0   : > { %v462_v51 = vmul.f32 %v1106_v50, %v446_v24  ;;  %v1100_v24 = vld [vmem:[#allocation8 + $0x18] sm:$0xff]  }
 0x2b1   : > { %984 = vmatpush3.bf16.msra.mxu0 %v1100_v24 }
 0x2b2   : > { %v468_v53 = vmul.f32 %v467_v49, %v462_v51  ;;  %985 = vmatprep.subr.bf16.mxu0 %v1309_v0 }
 0x2b3   : > { %v1108_v54 = vpop.eup %1107 }
 0x2b4   : > { %v463_v55 = vmul.f32 %v1108_v54, %v447_v29  ;;  %v474_v56 = vadd.f32 %v473_v52, %v468_v53 }
 0x2b5   : > { %986 = vmatpush3.bf16.msra.mxu0 %v1101_v25 }
 0x2b6   : > { %v469_v57 = vmul.f32 %v467_v49, %v463_v55  ;;  %v476_v59 = vmul.f32 0.1, %v474_v56  ;;  %987 = vmatprep.subr.bf16.mxu0 %v1309_v0 }
 0x2b8   : > { %v475_v58 = vadd.f32 %v473_v52, %v469_v57  ;;  %v478_v61 = vmax.f32 %v474_v56, %v476_v59 }
 0x2b9   : > { %988 = vmatpush3.bf16.msra.mxu0 %v1102_v27 }
 0x2ba   : > { %v477_v60 = vmul.f32 0.1, %v475_v58  ;;  %989 = vmatprep.subr.bf16.mxu0 %v1309_v0 }
 0x2bc   : > { %v479_v62 = vmax.f32 %v475_v58, %v477_v60 }
 0x2be   : > { %v480_v63 = vpack.c.bf16 %v479_v62, %v478_v61 }
 0x2c0   : > { %974 = vmatmul.mubr.bf16.vlgmr.msra.gmra.mrb[0].mxu1 %v480_v63 }
 0x393   : > { %v583_v3 = vpop.f32.mrb[0].mxu1 }
 0x394   : > { %v584_v4 = vadd.f32 %v583_v3, %v500_v2  ;;  %v975_v5 = vpop.f32.mrb[1].mxu1 }
 0x395   : > { %v586_v6 = vpop.f32.mrb[2].mxu1 }
 0x396   : > { %v587_v7 = vadd.f32 %v586_v6, %v500_v2  ;;  %590 = vadd.xlane.f32.xlu0 %v584_v4  ;;  %v976_v8 = vpop.f32.mrb[3].mxu1 }
 0x398   : > { %592 = vadd.xlane.f32.xlu1 %v587_v7 }
 0x423   : > { %v591_v10 = vpop.xlane.xlu0 %590 }
 0x424   : > { %v594_v12 = vmul.f32 0.03125, %v591_v10 }
 0x425   : > { %v593_v14 = vpop.xlane.xlu1 %592 }
 0x426   : > { %v596_v15 = vsub.f32 %v584_v4, %v594_v12  ;;  %v595_v16 = vmul.f32 0.03125, %v593_v14 }
 0x428   : > { %v597_v17 = vsub.f32 %v587_v7, %v595_v16  ;;  %v598_v18 = vmul.f32 %v596_v15, %v596_v15 }
 0x42a   : > { %v600_v19 = vmul.f32 %v1599_v26, %v598_v18  ;;  %v599_v20 = vmul.f32 %v597_v17, %v597_v17 }
 0x42c   : > { %602 = vadd.xlane.f32.xlu0 %v600_v19  ;;  %v601_v21 = vmul.f32 %v1599_v26, %v599_v20  ;;  %v1103_v26 = vld [vmem:[#allocation8 + $0x30] sm:$0xff]  }
 0x42d   : > { %990 = vmatpush3.bf16.msra.mxu0 %v1103_v26 }
 0x42e   : > { %604 = vadd.xlane.f32.xlu1 %v601_v21  ;;  %991 = vmatprep.subr.bf16.mxu0 %v1309_v0  ;;  %v623_v0 = vrot.slane %v1595_v13, %v622_v36 }
 0x431   : > { %992 = vmatpush3.bf16.msra.mxu0 %v1104_v28 }
 0x4b9   : > { %v603_v29 = vpop.xlane.xlu0 %602 }
 0x4ba   : > { %v606_v30 = vmul.f32 0.03125, %v603_v29 }
 0x4bb   : > { %v605_v31 = vpop.xlane.xlu1 %604 }
 0x4bc   : > { %v608_v32 = vadd.f32 1e-05, %v606_v30  ;;  %v607_v33 = vmul.f32 0.03125, %v605_v31 }
 0x4be   : > { %1109 = vrsqrt.f32 %v608_v32  ;;  %v609_v34 = vadd.f32 1e-05, %v607_v33 }
 0x4c0   : > { %1111 = vrsqrt.f32 %v609_v34 }
 0x4c8   : > { %v1110_v38 = vpop.eup %1109 }
 0x4c9   : > { %v612_v39 = vmul.f32 %v1110_v38, %v596_v15 }
 0x4ca   : > { %v1112_v40 = vpop.eup %1111 }
 0x4cb   : > { %v613_v41 = vmul.f32 %v1112_v40, %v597_v17  ;;  %v618_v42 = vmul.f32 %v617_v37, %v612_v39 }
 0x4cd   : > { %v619_v43 = vmul.f32 %v617_v37, %v613_v41  ;;  %v624_v44 = vadd.f32 %v623_v0, %v618_v42 }
 0x4cf   : > { %v625_v45 = vadd.f32 %v623_v0, %v619_v43  ;;  %v626_v46 = vmul.f32 0.1, %v624_v44 }
 0x4d1   : > { %v627_v47 = vmul.f32 0.1, %v625_v45  ;;  %v628_v48 = vmax.f32 %v624_v44, %v626_v46 }
 0x4d3   : > { %v629_v49 = vmax.f32 %v625_v45, %v627_v47 }
 0x4d5   : > { %v630_v50 = vpack.c.bf16 %v629_v49, %v628_v48 }
 0x4d7   : > { %994 = vmatmul.mubr.bf16.vlgmr.msra.gmra.mrb[4].mxu0 %v630_v50 }
 0x5aa   : > { %v736_v13 = vpop.f32.mrb[4].mxu0 }
 0x5ab   : > { %v737_v51 = vadd.f32 %v894_v11, %v736_v13  ;;  %v995_v52 = vpop.f32.mrb[5].mxu0 }
 0x5ac   : > { %v739_v53 = vpop.f32.mrb[6].mxu0 }
 0x5ad   : > { %743 = vst [vmem:[%s313_s10] sm:$0xff] %v737_v51  ;;  %v740_v54 = vadd.f32 %v894_v11, %v739_v53  ;;  %v996_v55 = vpop.f32.mrb[7].mxu0 }
 0x5af   : > { %744 = vst [vmem:[%s313_s10 + $0x8] sm:$0xff] %v740_v54 }
 0x5b0   : > { %1240 = shalt.err (!%p1237_p4)
}
 0x5b1   : > { %s1241_s29 = scalar_lea.hbm %s1639_s20, 256  ;;  %s1245_s26 = scalar_lea.hbm %s1689_s6, 512 }
 0x5b2   : > { %p1242_p9 = scmp.ne.s32.totalorder %s1639_s20, %s1241_s29  ;;  %p1246_p8 = scmp.lt.u32.totalorder %s1639_s20, %s1689_s6 }
 0x5b3   : > { %p1247_p13 = scmp.lt.u32.totalorder %s1245_s26, %s1241_s29  ;;  %p1249_p10 = scmp.lt.u32.totalorder %s1241_s29, %s1639_s20 }
 0x5b4   : > { %p1243_p0 = pnand %p1242_p9, %p1503_p5 }
 0x5b5   : > { %p1248_p6 = por %p1247_p13, %p1246_p8 }
 0x5b6   : > { %p1244_p11 = pneg %p1243_p0 }
 0x5b7   : > { %p1250_p3 = por %p1249_p10, %p1248_p6 }
 0x5b9   : > { %p1251_p7 = pnand %p1250_p3, %p1244_p11 }
 0x5bb   : > { %1254 = shalt.err (!%p1251_p7)
}
 0x5bc   : > { %s1312_s17 = smov 128   ;;  %s1313_s12 = smov 8  }
 0x5bd   : > { %1011 = dma.vmem_to_hbm [thread:$0]  (%p1503_p5), %s1634_s11, 256, %s1639_s20, %s746_s19, %s1312_s17, %s1312_s17, %s1313_s12  }
 0x5be PF: > { %s774_s25 = sand.u32 1, %s1289_s21   ;;  %p1707_p12 = scmp.ne.s32.totalorder %s1694_s28, 0 }
 0x5bf   : > { %p1708_p1 = scmp.ge.s32.totalorder %s1301_s24, 2  ;;  %s775_s7 = scalar_lea.sflag [#allocation4], %s774_s25 }
 0x5c1   : > { %p1028_p2 = pnand %p1708_p1, %p1707_p12 }
 0x5c3   : > { %1284 = dma.done.wait (!%p1028_p2), %s775_s7, 256  }
 0x5c4   : > { %1286 = vsyncadd (!%p1028_p2), %s775_s7, 4294967040  ;;  %p21_p4 = scmp.ge.s32.totalorder %s1489_s18, 4   ;;  %s1709_s21 = smov %s1293_s22 }
 0x5c5   : > { %s1710_s22 = smov %s1297_s23  ;;  %s1711_s23 = smov %s1499_s14 }
 0x5c6   : > { %s1712_s24 = smov %s1489_s18  ;;  %23 = sbr.rel (!%p21_p4) target bundleno = 7 (0x7), region = 101 }
 0x5cd   :  { %780 = vsyncpa [#allocation3], 1 }
 0x5ce   :  { %782 = vsyncpa [#allocation3 + $0x1], 1 }
 0x5cf   :  { %783 = vsyncpa [#allocation6], 1 }
 0x5d0   :  { %784 = vsyncpa [#allocation9], 1 }
 0x5d1   :  { %785 = vsyncpa [#allocation4], 1 }
 0x5d2   :  { %787 = vsyncpa [#allocation4 + $0x1], 1 }

</bundles_post_ra>
